<compile_context>
chip_gen: v6e
topology: v6e:2x2x1
jax: 0.10.0
libtpu: 0.0.40
codegen_flags: <defaults>
</compile_context>

<pallas_src>
import functools

import jax
import jax.numpy as jnp
from jax import lax
from jax.experimental import pallas as pl
from jax.experimental.pallas import tpu as pltpu


# ----------------------------- kernel body --------------------------------- #

def featurenn_kernel(x_ref, w1_ref, b1_ref, w2t_ref, b2h_ref, mid_ref, hs_ref,
                     o_ref):
    # Hidden layer: (TB, D) @ (D, H) in bf16, accumulate f32, + bias, ReLU.
    xb = x_ref[...].astype(jnp.bfloat16)
    h = jnp.dot(xb, w1_ref[...], preferred_element_type=jnp.float32)   # (TB, H)
    h = jnp.maximum(h + b1_ref[...], 0.0).astype(jnp.bfloat16)

    # Output layer, transposed + pre-halved:  zh = (0.5*w2)^T @ h^T + 0.5*b2
    # NT dot_general (contract dim 1 of both operands) -> lane-dense (P8, TB).
    zh = lax.dot_general(w2t_ref[...], h,
                         dimension_numbers=(((1,), (1,)), ((), ())),
                         preferred_element_type=jnp.float32)           # (P8, TB)
    zh = zh + b2h_ref[...]

    # sigmoid(z) = 0.5*tanh(z/2) + 0.5, folded with the param_bounds affine:
    #   out = lower + (upper-lower)*sigmoid(z) = mid + half_span * tanh(z/2)
    o_ref[...] = (mid_ref[...] + hs_ref[...] * jnp.tanh(zh)).astype(o_ref.dtype)


# ------------------------------ wrapper ------------------------------------ #

def _round_up(a, b):
    return ((a + b - 1) // b) * b


def _vmem_capacity_bytes():
    try:
        info = pltpu.get_tpu_info()
        cap = getattr(info, "vmem_capacity_bytes", None)
        if cap:
            return int(cap)
    except Exception:
        pass
    return 64 << 20   # conservative fallback (v7x per-TensorCore VMEM)


@functools.partial(jax.jit, static_argnames=("block_rows",))
def feature_nn_forward(x, w1, b1, w2, b2, lower, upper, *, block_rows=8192):
    """x: (B, D) f32.  Returns (B, 4) f32 = lower + (upper-lower)*sigmoid(MLP(x))."""
    B, D = x.shape
    H = w1.shape[1]            # 64
    P = w2.shape[1]            # 4
    P8 = _round_up(P, 8)       # sublane-aligned output rows (extra rows are zeros)

    # ---- batch tile: multiple of 128 (it is the lane dim of the output), ----
    # ---- and at least 2 grid steps when the batch allows it (v7x megacore). --
    Bp_min = _round_up(B, 128)
    TB = max(128, _round_up(min(int(block_rows), Bp_min), 128))
    if Bp_min > 128:
        TB = min(TB, _round_up(Bp_min // 2, 128))

    # ---- VMEM budget: double-buffered x/out blocks + h intermediate + temps. --
    def vmem_budget(tb):
        lp128 = lambda n: _round_up(n, 128)
        f32, bf16 = 4, 2
        x_blk = tb * lp128(D) * f32                 # pipelined input block (1 buf)
        o_blk = P8 * tb * f32                       # pipelined output block (1 buf)
        temps = (tb * lp128(D) * bf16               # x cast to bf16
                 + tb * lp128(H) * (f32 + bf16)     # h (f32) + h (bf16)
                 + 3 * P8 * tb * f32)               # zh / tanh / epilogue temps
        params = (lp128(H) * (D + 2) * f32 + lp128(H) * P8 * bf16
                  + 3 * P8 * 128 * f32)
        return 2 * (x_blk + o_blk) + temps + 2 * params + (2 << 20)

    cap = int(0.75 * _vmem_capacity_bytes())        # headroom for Mosaic scratch
    while vmem_budget(TB) > cap and TB > 128:
        TB = max(128, _round_up(TB // 2, 128))
    vmem_limit = int(min(max(vmem_budget(TB), 16 << 20), cap))

    Bp = _round_up(B, TB)
    if Bp != B:
        # Padded rows produce finite garbage that is sliced off below.
        x = jnp.pad(x, ((0, Bp - B), (0, 0)))
    grid = (Bp // TB,)

    # ---- fold constants: bf16 weights, halved w2/b2, mid / half_span. --------
    w1_b = w1.astype(jnp.bfloat16)                                        # (D, H)
    w2t_half = (jnp.zeros((P8, H), jnp.float32)
                .at[:P].set(0.5 * w2.T)).astype(jnp.bfloat16)             # (P8, H)
    b2_half = jnp.zeros((P8, 1), jnp.float32).at[:P].set(0.5 * b2.reshape(P, 1))
    mid = jnp.zeros((P8, 1), jnp.float32).at[:P].set(
        0.5 * (lower + upper).reshape(P, 1))
    half_span = jnp.zeros((P8, 1), jnp.float32).at[:P].set(
        0.5 * (upper - lower).reshape(P, 1))

    cost = pl.CostEstimate(
        flops=2 * Bp * (D * H + H * P8),
        transcendentals=Bp * P8,
        bytes_accessed=4 * (Bp * D + P8 * Bp + D * H + H + P8 * H + 3 * P8),
    )

    const2d = lambda shape: pl.BlockSpec(shape, lambda i: (0, 0))
    # TODO(synk): once Buffered(1) is verified on all target generations, use
    # pipeline_mode=pl.Buffered(1) on the constant specs to drop the dead
    # second pipeline buffer of the resident weights.

    out_t = pl.pallas_call(
        featurenn_kernel,
        out_shape=jax.ShapeDtypeStruct((P8, Bp), jnp.float32),
        grid=grid,
        in_specs=[
            pl.BlockSpec((TB, D), lambda i: (i, 0)),   # x: tiled over batch
            const2d((D, H)),                           # w1 (bf16), VMEM-resident
            const2d((1, H)),                           # b1
            const2d((P8, H)),                          # (0.5*w2)^T (bf16)
            const2d((P8, 1)),                          # 0.5*b2
            const2d((P8, 1)),                          # mid = (lo+hi)/2
            const2d((P8, 1)),                          # half_span = (hi-lo)/2
        ],
        out_specs=pl.BlockSpec((P8, TB), lambda i: (0, i)),   # lane-dense output
        compiler_params=pltpu.CompilerParams(
            dimension_semantics=("parallel",),          # megacore shard on v7x
            vmem_limit_bytes=vmem_limit,
        ),
        cost_estimate=cost,
    )(x, w1_b, b1, w2t_half, b2_half, mid, half_span)

    # (P8, Bp) -> (B, P); the transpose is 4 rows, negligible next to the kernel.
    return out_t[:P, :B].T
    # TODO(synk): for the NAM-style multi-feature workload, stack F nets with a
    # leading "parallel" F grid axis, pl.Squeezed() leading dims on the
    # (F,D,H)/(F,H,P) weights, and keep this lane-dense (F, P8, B) output layout.


# ------------------------------ init / test -------------------------------- #

def init_params(key, input_size, hidden=64, out=4):
    # Mimics PyTorch nn.Linear default init: U(-1/sqrt(fan_in), 1/sqrt(fan_in)).
    k1, k2, k3, k4 = jax.random.split(key, 4)
    lim1 = 1.0 / jnp.sqrt(jnp.float32(input_size))
    lim2 = 1.0 / jnp.sqrt(jnp.float32(hidden))
    w1 = jax.random.uniform(k1, (input_size, hidden), jnp.float32, -lim1, lim1)
    b1 = jax.random.uniform(k2, (1, hidden), jnp.float32, -lim1, lim1)
    w2 = jax.random.uniform(k3, (hidden, out), jnp.float32, -lim2, lim2)
    b2 = jax.random.uniform(k4, (1, out), jnp.float32, -lim2, lim2)
    return w1, b1, w2, b2


if __name__ == "__main__":
    key = jax.random.PRNGKey(0)
    kx, kp = jax.random.split(key)

    batch = 200           # not a multiple of 128 -> exercises padding + 2-step grid
    input_size = 16
    x = jax.random.normal(kx, (batch, input_size), jnp.float32)

    w1, b1, w2, b2 = init_params(kp, input_size)

    # param_bounds = [(lower_i, upper_i)] for each of the 4 outputs
    param_bounds = [(0.0, 1.0), (0.1, 2.0), (-1.0, 1.0), (0.5, 5.0)]
    lower = jnp.array([[lo for lo, _ in param_bounds]], dtype=jnp.float32)  # (1, 4)
    upper = jnp.array([[hi for _, hi in param_bounds]], dtype=jnp.float32)  # (1, 4)

    out = feature_nn_forward(x, w1, b1, w2, b2, lower, upper)
    jax.block_until_ready(out)
    assert out.shape == (batch, 4)

    # Reference matching the kernel's bf16-operand / f32-accumulate matmuls.
    xb = x.astype(jnp.bfloat16)
    h_ref = jnp.maximum(
        jnp.dot(xb, w1.astype(jnp.bfloat16), preferred_element_type=jnp.float32) + b1,
        0.0)
    z_ref = jnp.dot(h_ref.astype(jnp.bfloat16), w2.astype(jnp.bfloat16),
                    preferred_element_type=jnp.float32) + b2
    ref_bf16 = lower + (upper - lower) * jax.nn.sigmoid(z_ref)
    assert jnp.allclose(out, ref_bf16, atol=2e-3), "mismatch vs bf16-matched reference"

    # Loose check against the pure-f32 math of the original module.
    h32 = jnp.maximum(x @ w1 + b1, 0.0)
    ref_f32 = lower + (upper - lower) * jax.nn.sigmoid(h32 @ w2 + b2)
    assert jnp.allclose(out, ref_f32, atol=5e-2), "mismatch vs f32 reference"

    print("KERNEL_OK")
</pallas_src>

<mosaic_0001>
module attributes {stable_mosaic.version = 11 : i64} {
  func.func @featurenn_kernel(%arg0: i32, %arg1: memref<128x16xf32, #tpu.memory_space<vmem>>, %arg2: memref<16x64xbf16, #tpu.memory_space<vmem>>, %arg3: memref<1x64xf32, #tpu.memory_space<vmem>>, %arg4: memref<8x64xbf16, #tpu.memory_space<vmem>>, %arg5: memref<8x1xf32, #tpu.memory_space<vmem>>, %arg6: memref<8x1xf32, #tpu.memory_space<vmem>>, %arg7: memref<8x1xf32, #tpu.memory_space<vmem>>, %arg8: memref<8x128xf32, #tpu.memory_space<vmem>>) attributes {dimension_semantics = [#tpu.dimension_semantics<parallel>], iteration_bounds = array<i64: 2>, scalar_prefetch = 0 : i64, scratch_operands = 0 : i64, tpu.core_type = #tpu.core_type<tc>, window_params = [{transform_indices = @transform_0, window_bounds = array<i64: 128, 16>}, {pipeline_mode = #tpu.pipeline_mode<synchronous>, transform_indices = @transform_1, window_bounds = array<i64: 16, 64>}, {pipeline_mode = #tpu.pipeline_mode<synchronous>, transform_indices = @transform_2, window_bounds = array<i64: 1, 64>}, {pipeline_mode = #tpu.pipeline_mode<synchronous>, transform_indices = @transform_3, window_bounds = array<i64: 8, 64>}, {pipeline_mode = #tpu.pipeline_mode<synchronous>, transform_indices = @transform_4, window_bounds = array<i64: 8, 1>}, {pipeline_mode = #tpu.pipeline_mode<synchronous>, transform_indices = @transform_5, window_bounds = array<i64: 8, 1>}, {pipeline_mode = #tpu.pipeline_mode<synchronous>, transform_indices = @transform_6, window_bounds = array<i64: 8, 1>}, {transform_indices = @transform_7, window_bounds = array<i64: 8, 128>}]} {
    %c0 = arith.constant 0 : index
    %c0_0 = arith.constant 0 : index
    %0 = vector.load %arg1[%c0, %c0_0] : memref<128x16xf32, #tpu.memory_space<vmem>>, vector<128x16xf32>
    %1 = arith.truncf %0 : vector<128x16xf32> to vector<128x16xbf16>
    %c0_1 = arith.constant 0 : index
    %c0_2 = arith.constant 0 : index
    %2 = vector.load %arg2[%c0_1, %c0_2] : memref<16x64xbf16, #tpu.memory_space<vmem>>, vector<16x64xbf16>
    %cst = arith.constant dense<0.000000e+00> : vector<128x64xf32>
    %3 = tpu.matmul %1, %2, %cst {dimension_numbers = #tpu.dot_dimension_numbers<[1], [0], [0], [1], [0, 0, 1, 1], [], []>} : vector<128x16xbf16>, vector<16x64xbf16>, vector<128x64xf32> -> vector<128x64xf32>
    %c0_3 = arith.constant 0 : index
    %c0_4 = arith.constant 0 : index
    %4 = vector.load %arg3[%c0_3, %c0_4] : memref<1x64xf32, #tpu.memory_space<vmem>>, vector<1x64xf32>
    %5 = vector.broadcast %4 : vector<1x64xf32> to vector<128x64xf32>
    %6 = arith.addf %3, %5 : vector<128x64xf32>
    %cst_5 = arith.constant 0.000000e+00 : f32
    %7 = vector.broadcast %cst_5 : f32 to vector<128x64xf32>
    %8 = arith.maximumf %6, %7 : vector<128x64xf32>
    %9 = arith.truncf %8 : vector<128x64xf32> to vector<128x64xbf16>
    %c0_6 = arith.constant 0 : index
    %c0_7 = arith.constant 0 : index
    %10 = vector.load %arg4[%c0_6, %c0_7] : memref<8x64xbf16, #tpu.memory_space<vmem>>, vector<8x64xbf16>
    %cst_8 = arith.constant dense<0.000000e+00> : vector<8x128xf32>
    %11 = tpu.matmul %10, %9, %cst_8 {dimension_numbers = #tpu.dot_dimension_numbers<[1], [1], [0], [0], [0, 0, 1, 0], [], []>} : vector<8x64xbf16>, vector<128x64xbf16>, vector<8x128xf32> -> vector<8x128xf32>
    %c0_9 = arith.constant 0 : index
    %c0_10 = arith.constant 0 : index
    %12 = vector.load %arg5[%c0_9, %c0_10] : memref<8x1xf32, #tpu.memory_space<vmem>>, vector<8x1xf32>
    %13 = vector.broadcast %12 : vector<8x1xf32> to vector<8x128xf32>
    %14 = arith.addf %11, %13 : vector<8x128xf32>
    %c0_11 = arith.constant 0 : index
    %c0_12 = arith.constant 0 : index
    %15 = vector.load %arg6[%c0_11, %c0_12] : memref<8x1xf32, #tpu.memory_space<vmem>>, vector<8x1xf32>
    %c0_13 = arith.constant 0 : index
    %c0_14 = arith.constant 0 : index
    %16 = vector.load %arg7[%c0_13, %c0_14] : memref<8x1xf32, #tpu.memory_space<vmem>>, vector<8x1xf32>
    %17 = math.tanh %14 : vector<8x128xf32>
    %18 = vector.broadcast %16 : vector<8x1xf32> to vector<8x128xf32>
    %19 = arith.mulf %18, %17 : vector<8x128xf32>
    %20 = vector.broadcast %15 : vector<8x1xf32> to vector<8x128xf32>
    %21 = arith.addf %20, %19 : vector<8x128xf32>
    %c0_15 = arith.constant 0 : index
    %c0_16 = arith.constant 0 : index
    %22 = vector.load %arg8[%c0_15, %c0_16] : memref<8x128xf32, #tpu.memory_space<vmem>>, vector<8x128xf32>
    tpu.vector_store %arg8[%c0_15, %c0_16], %21 {strides = array<i32>} : memref<8x128xf32, #tpu.memory_space<vmem>>, vector<8x128xf32>,
    return
  }
  func.func @transform_0(%arg0: i32) -> (i32, i32) {
    %c0_i32 = arith.constant 0 : i32
    %c0_i32_0 = arith.constant 0 : i32
    return %arg0, %c0_i32 : i32, i32
  }
  func.func @transform_1(%arg0: i32) -> (i32, i32) {
    %c0_i32 = arith.constant 0 : i32
    %c0_i32_0 = arith.constant 0 : i32
    %c0_i32_1 = arith.constant 0 : i32
    return %c0_i32, %c0_i32_0 : i32, i32
  }
  func.func @transform_2(%arg0: i32) -> (i32, i32) {
    %c0_i32 = arith.constant 0 : i32
    %c0_i32_0 = arith.constant 0 : i32
    %c0_i32_1 = arith.constant 0 : i32
    return %c0_i32, %c0_i32_0 : i32, i32
  }
  func.func @transform_3(%arg0: i32) -> (i32, i32) {
    %c0_i32 = arith.constant 0 : i32
    %c0_i32_0 = arith.constant 0 : i32
    %c0_i32_1 = arith.constant 0 : i32
    return %c0_i32, %c0_i32_0 : i32, i32
  }
  func.func @transform_4(%arg0: i32) -> (i32, i32) {
    %c0_i32 = arith.constant 0 : i32
    %c0_i32_0 = arith.constant 0 : i32
    %c0_i32_1 = arith.constant 0 : i32
    return %c0_i32, %c0_i32_0 : i32, i32
  }
  func.func @transform_5(%arg0: i32) -> (i32, i32) {
    %c0_i32 = arith.constant 0 : i32
    %c0_i32_0 = arith.constant 0 : i32
    %c0_i32_1 = arith.constant 0 : i32
    return %c0_i32, %c0_i32_0 : i32, i32
  }
  func.func @transform_6(%arg0: i32) -> (i32, i32) {
    %c0_i32 = arith.constant 0 : i32
    %c0_i32_0 = arith.constant 0 : i32
    %c0_i32_1 = arith.constant 0 : i32
    return %c0_i32, %c0_i32_0 : i32, i32
  }
  func.func @transform_7(%arg0: i32) -> (i32, i32) {
    %c0_i32 = arith.constant 0 : i32
    %c0_i32_0 = arith.constant 0 : i32
    return %c0_i32, %arg0 : i32, i32
  }
}

</mosaic_0001>

<bundles_post_ra>
// kernel: feature_nn_forward.1
= control target key start
LH: loop header
LB: loop body
LE: loop exit
PB: predicated region body
PF: predicated region fallthrough
CT: control target
= control target key end

     0   :  { %s753_s24 = smov 0   ;;  %s861_s0 = inlined_call_operand.vmem [shape: f32[256,16], index: 0, kind: input, shape index: {}]   ;;  %s862_s1 = inlined_call_operand.vmem [shape: bf16[16,64], index: 1, kind: input, shape index: {}]   ;;  %s863_s2 = inlined_call_operand.vmem [shape: f32[1,64], index: 2, kind: input, shape index: {}]   ;;  %s864_s3 = inlined_call_operand.vmem [shape: bf16[8,64], index: 3, kind: input, shape index: {}]   ;;  %s865_s4 = inlined_call_operand.vmem [shape: f32[8,1], index: 4, kind: input, shape index: {}]   ;;  %s866_s5 = inlined_call_operand.vmem [shape: f32[8,1], index: 5, kind: input, shape index: {}]   ;;  %s867_s6 = inlined_call_operand.vmem [shape: f32[8,1], index: 6, kind: input, shape index: {}]   ;;  %s868_s7 = inlined_call_operand.vmem [shape: f32[8,256], index: 7, kind: output, shape index: {}]  }
   0x1 LB: > { %s759_s25 = sadd.s32 4294967295, %s708_s24   ;;  %p613_p0 = scmp.ge.s32.totalorder %s708_s24, 1  ;;  %s708_s24 = sphi %s753_s24, %s17_s24  }
   0x2   : > { %p238_p1 = scmp.lt.s32.totalorder %s708_s24, 3 }
   0x4   : > { %p239_p2 = pnand %p613_p0, %p238_p1 }
   0x5   : > { %s614_s28 = sshll.u32 (!%p239_p2), %s759_s25, 4  ;;  %p275_p4 = scmp.lt.s32.totalorder (!%p239_p2), %s759_s25, 1 }
   0x6   : > { %242 = sbr.rel (%p239_p2) target bundleno = 523 (0x20b), region = 48  ;;  %p270_p3 = scmp.lt.s32.totalorder (!%p239_p2), %s614_s28, 31 }
   0xb   : > { %v699_v0 = vld [vmem:[%s862_s1] sm:$0xff]   ;;  %s870_s28 = smov (!%p270_p3, %s614_s28), 31  ;;  %vm319_vm0 = vcmask 130048   ;;  %v710_v25 = vmov 0.0   ;;  %vm711_vm1 = vmmov 0   ;;  %v712_v28 = vmov 0  }
   0xc   : > { %648 = vmatprep.subr.bf16.mxu0 %v699_v0  ;;  %s615_s29 = sshll.u32 %s870_s28, 3  ;;  %666 = vmatprep.subr.bf16.mxu1 %v710_v25  ;;  %v466_v26 = vld [vmem:[%s865_s4] sm:$0xff]  ;;  %vm472_vm2 = vcmask 523264   ;;  %s872_s25 = smov (!%p275_p4, %s759_s25), 1 }
   0xd   : > { %649 = vmatpush3.bf16.msra.mxu0 %v699_v0  ;;  %s770_s9 = scalar_lea.vmem %s861_s0, %s615_s29  ;;  %682 = vmatprep.mubr.msk.bf16.mxu1 %vm711_vm1, %v710_v25  ;;  %v540_v27 = vld [vmem:[%s866_s5] sm:$0xff]  ;;  %s616_s20 = sshll.u32 %s872_s25, 3 }
   0xe   : > { %v280_v1 = vld [vmem:[%s770_s9] sm:$0xff]  ;;  %v281_v2 = vld [vmem:[%s770_s9 + $0x8] sm:$0xff]  ;;  %v282_v3 = vld [vmem:[%s770_s9 + $0x10] sm:$0xff]  ;;  %697 = vset.pattern.permute.xlu0 %v712_v28  ;;  %698 = vset.pattern.permute.xlu1 %v712_v28  ;;  %s278_s23 = scalar_lea.vmem %s868_s7, %s616_s20 }
   0xf   : > { %v296_v4 = vpack.c.bf16 %v281_v2, %v280_v1  ;;  %v283_v5 = vld [vmem:[%s770_s9 + $0x18] sm:$0xff]  ;;  %v284_v6 = vld [vmem:[%s770_s9 + $0x20] sm:$0xff]  ;;  %v285_v7 = vld [vmem:[%s770_s9 + $0x28] sm:$0xff]  ;;  %469 = vperm.xlu0 %697, %v466_v26   ;;  %551 = vperm.xlu1 %698, %v540_v27  }
  0x10   : > { %v297_v8 = vpack.c.bf16 %v283_v5, %v282_v3  ;;  %v298_v9 = vpack.c.bf16 %v285_v7, %v284_v6  ;;  %v286_v10 = vld [vmem:[%s770_s9 + $0x30] sm:$0xff]  ;;  %v287_v11 = vld [vmem:[%s770_s9 + $0x38] sm:$0xff]  ;;  %v288_v12 = vld [vmem:[%s770_s9 + $0x40] sm:$0xff] }
  0x11   : > { %650 = vmatprep.mubr.msk.bf16.mxu0 %vm319_vm0, %v296_v4  ;;  %v289_v13 = vld [vmem:[%s770_s9 + $0x48] sm:$0xff]  ;;  %v299_v14 = vpack.c.bf16 %v287_v11, %v286_v10  ;;  %v290_v16 = vld [vmem:[%s770_s9 + $0x50] sm:$0xff]  ;;  %v291_v17 = vld [vmem:[%s770_s9 + $0x58] sm:$0xff] }
  0x12   : > { %651 = vmatmul.mubr.msk.bf16.vlgmr.msra.gmra.mxu0 %vm319_vm0, %v297_v8  ;;  %v300_v15 = vpack.c.bf16 %v289_v13, %v288_v12  ;;  %v292_v18 = vld [vmem:[%s770_s9 + $0x60] sm:$0xff]  ;;  %v293_v19 = vld [vmem:[%s770_s9 + $0x68] sm:$0xff]  ;;  %v301_v20 = vpack.c.bf16 %v291_v17, %v290_v16  ;;  %v294_v22 = vld [vmem:[%s770_s9 + $0x70] sm:$0xff] }
  0x13   : > { %654 = vmatprep.mubr.msk.bf16.mxu0 %vm319_vm0, %v298_v9  ;;  %v302_v21 = vpack.c.bf16 %v293_v19, %v292_v18  ;;  %v295_v23 = vld [vmem:[%s770_s9 + $0x78] sm:$0xff]  ;;  %v541_v29 = vld [vmem:[%s867_s6] sm:$0xff] }
  0x14   : > { %v303_v24 = vpack.c.bf16 %v295_v23, %v294_v22  ;;  %545 = vperm.xlu0 %697, %v541_v29   ;;  %v810_v31 = vld [vmem:[%s863_s2] ss:$0 sm:$0xff] }
  0x1a   : > { %655 = vmatmul.mubr.msk.bf16.gmra.mxu0 %vm319_vm0, %v299_v14 }
  0x1b   : > { %658 = vmatprep.mubr.msk.bf16.mxu0 %vm319_vm0, %v300_v15 }
  0x22   : > { %659 = vmatmul.mubr.msk.bf16.gmra.mxu0 %vm319_vm0, %v301_v20 }
  0x23   : > { %662 = vmatprep.mubr.msk.bf16.mxu0 %vm319_vm0, %v302_v21 }
  0x2a   : > { %663 = vmatmul.mubr.msk.bf16.gmra.mxu0 %vm319_vm0, %v303_v24 }
  0xd2   : > { %v652_v30 = vpop.f32.mrf.mxu0 }
  0xd3   : > { %v387_v33 = vadd.f32 %v652_v30, %v810_v31 }
  0xd4   : > { %v378_v32 = vpop.f32.mrf.mxu0 }
  0xd5   : > { %v379_v35 = vadd.f32 %v810_v31, %v378_v32  ;;  %v443_v38 = vmax.f32 %v387_v33, 0.0  ;;  %v465_v32 = vld [vmem:[%s864_s3] sm:$0xf]  ;;  %v470_v33 = vpop.permute.xlu0 %469 }
  0xd6   : > { %v653_v34 = vpop.f32.mrf.mxu0 }
  0xd7   : > { %v390_v36 = vadd.f32 %v653_v34, %v810_v31  ;;  %v441_v42 = vmax.f32 %v379_v35, 0.0 }
  0xd8   : > { %v381_v37 = vpop.f32.mrf.mxu0 }
  0xd9   : > { %v444_v39 = vmax.f32 %v390_v36, 0.0  ;;  %v382_v40 = vadd.f32 %v810_v31, %v381_v37 }
  0xda   : > { %v656_v41 = vpop.f32.mrf.mxu0 }
  0xdb   : > { %v816_v43 = vpack.c.bf16 %v444_v39, %v443_v38  ;;  %v442_v44 = vmax.f32 %v382_v40, 0.0  ;;  %v403_v17 = vadd.f32 %v656_v41, %v810_v31  ;;  %v546_v39 = vpop.permute.xlu0 %545  ;;  %v552_v40 = vpop.permute.xlu1 %551 }
  0xdc   : > { %v394_v45 = vpop.f32.mrf.mxu0 }
  0xdd   : > { %v818_v46 = vpack.c.bf16 %v442_v44, %v441_v42  ;;  %v447_v20 = vmax.f32 %v403_v17, 0.0  ;;  %v395_v23 = vadd.f32 %v810_v31, %v394_v45  ;;  %v480_v30 = vsel %vm472_vm2, %v816_v43, 0 }
  0xde   : > { %v657_v47 = vpop.f32.mrf.mxu0 }
  0xdf   : > { %v406_v15 = vadd.f32 %v657_v47, %v810_v31  ;;  %v445_v27 = vmax.f32 %v395_v23, 0.0 }
  0xe0   : > { %v397_v48 = vpop.f32.mrf.mxu0 }
  0xe1   : > { %v448_v18 = vmax.f32 %v406_v15, 0.0  ;;  %v398_v22 = vadd.f32 %v810_v31, %v397_v48 }
  0xe2   : > { %v660_v49 = vpop.f32.mrf.mxu0 }
  0xe3   : > { %v419_v5 = vadd.f32 %v660_v49, %v810_v31  ;;  %v460_v21 = vpack.c.bf16 %v448_v18, %v447_v20  ;;  %v446_v24 = vmax.f32 %v398_v22, 0.0 }
  0xe4   : > { %v410_v50 = vpop.f32.mrf.mxu0 }
  0xe5   : > { %v451_v8 = vmax.f32 %v419_v5, 0.0  ;;  %v411_v11 = vadd.f32 %v810_v31, %v410_v50  ;;  %v486_v26 = vsel %vm472_vm2, %v460_v21, 0  ;;  %v459_v28 = vpack.c.bf16 %v446_v24, %v445_v27 }
  0xe6   : > { %v661_v51 = vpop.f32.mrf.mxu0 }
  0xe7   : > { %v422_v3 = vadd.f32 %v661_v51, %v810_v31  ;;  %v449_v14 = vmax.f32 %v411_v11, 0.0  ;;  %v483_v29 = vsel %vm472_vm2, %v459_v28, 0 }
  0xe8   : > { %v413_v52 = vpop.f32.mrf.mxu0 }
  0xe9   : > { %v452_v6 = vmax.f32 %v422_v3, 0.0  ;;  %v414_v10 = vadd.f32 %v810_v31, %v413_v52 }
  0xea   : > { %v664_v53 = vpop.f32.mrf.mxu0 }
  0xeb   : > { %v435_v55 = vadd.f32 %v664_v53, %v810_v31  ;;  %v462_v9 = vpack.c.bf16 %v452_v6, %v451_v8  ;;  %v450_v12 = vmax.f32 %v414_v10, 0.0 }
  0xec   : > { %v426_v54 = vpop.f32.mrf.mxu0 }
  0xed   : > { %v455_v59 = vmax.f32 %v435_v55, 0.0  ;;  %v427_v62 = vadd.f32 %v810_v31, %v426_v54  ;;  %v492_v13 = vsel %vm472_vm2, %v462_v9, 0  ;;  %v461_v16 = vpack.c.bf16 %v450_v12, %v449_v14 }
  0xee   : > { %v665_v56 = vpop.f32.mrf.mxu0 }
  0xef   : > { %v438_v57 = vadd.f32 %v665_v56, %v810_v31  ;;  %v453_v2 = vmax.f32 %v427_v62, 0.0  ;;  %v489_v19 = vsel %vm472_vm2, %v461_v16, 0 }
  0xf0   : > { %v429_v58 = vpop.f32.mrf.mxu0 }
  0xf1   : > { %v456_v60 = vmax.f32 %v438_v57, 0.0  ;;  %v430_v61 = vadd.f32 %v810_v31, %v429_v58  ;;  %v477_v31 = vsel %vm472_vm2, %v818_v46, 0 }
  0xf3   : > { %v464_v63 = vpack.c.bf16 %v456_v60, %v455_v59  ;;  %v454_v0 = vmax.f32 %v430_v61, 0.0 }
  0xf5   : > { %v498_v1 = vsel %vm472_vm2, %v464_v63, 0  ;;  %v463_v4 = vpack.c.bf16 %v454_v0, %v453_v2 }
  0xf6   : > { %667 = vmatpush3.bf16.xpose.msra.mxu1 %v498_v1 }
  0xf7   : > { %668 = vmatprep.subr.bf16.mxu1 %v710_v25  ;;  %v495_v7 = vsel %vm472_vm2, %v463_v4, 0 }
  0xfe   : > { %669 = vmatpush3.bf16.xpose.msra.mxu1 %v495_v7 }
  0xff   : > { %670 = vmatprep.subr.bf16.mxu1 %v710_v25 }
 0x106   : > { %671 = vmatpush3.bf16.xpose.msra.mxu1 %v492_v13 }
 0x107   : > { %672 = vmatprep.subr.bf16.mxu1 %v710_v25 }
 0x10e   : > { %673 = vmatpush3.bf16.xpose.msra.mxu1 %v489_v19 }
 0x10f   : > { %674 = vmatprep.subr.bf16.mxu1 %v710_v25 }
 0x116   : > { %675 = vmatpush3.bf16.xpose.msra.mxu1 %v486_v26 }
 0x117   : > { %676 = vmatprep.subr.bf16.mxu1 %v710_v25 }
 0x11e   : > { %677 = vmatpush3.bf16.xpose.msra.mxu1 %v483_v29 }
 0x11f   : > { %678 = vmatprep.subr.bf16.mxu1 %v710_v25 }
 0x126   : > { %679 = vmatpush3.bf16.xpose.msra.mxu1 %v480_v30 }
 0x127   : > { %680 = vmatprep.subr.bf16.mxu1 %v710_v25 }
 0x12e   : > { %681 = vmatpush3.bf16.xpose.msra.mxu1 %v477_v31 }
 0x135   : > { %683 = vmatmul.mubr.msk.bf16.vlgmr.msra.gmra.mxu1 %vm472_vm2, %v465_v32 }
 0x1f5   : > { %v534_v34 = vpop.f32.mrf.mxu1 }
 0x1f6   : > { %v535_v35 = vadd.f32 %v534_v34, %v470_v33 }
 0x1f7   : > { %v684_v36 = vpop.f32.mrf.mxu1 }
 0x1f8   : > { %700 = vtanh.f32 %v535_v35 }
 0x1f9   : > { %v537_v37 = vpop.f32.mrf.mxu1 }
 0x1fb   : > { %v685_v38 = vpop.f32.mrf.mxu1 }
 0x205   : > { %v701_v25 = vpop.eup %700 }
 0x206   : > { %v548_v41 = vmul.f32 %v701_v25, %v546_v39 }
 0x208   : > { %v554_v42 = vadd.f32 %v552_v40, %v548_v41 }
 0x20a   : > { %555 = vst [vmem:[%s278_s23] sm:$0xff] %v554_v42 }
 0x20b PF: > { %s17_s24 = sadd.s32 1, %s708_s24  }
 0x20c   : > { %p14_p5 = scmp.ge.s32.totalorder %s17_s24, 4  }
 0x20e   :  { %16 = sbr.rel (!%p14_p5) target bundleno = 1 (0x1), region = 78 }

</bundles_post_ra>
